<compile_context>
chip_gen: v5e
topology: v5e:2x2
jax: 0.10.0
libtpu: 0.0.40
codegen_flags: <defaults>
</compile_context>

<pallas_src>
import functools

import jax
import jax.numpy as jnp
from jax.experimental import pallas as pl
from jax.experimental.pallas import tpu as pltpu

_LANES = 128


def _tclip_kernel(x_ref, out_ref, acc_ref, *, tile_rows, valid_rows,
                  min_val, max_val, scale):
    c = pl.program_id(0)            # core-split axis
    i = pl.program_id(1)            # row-tile (reduction) axis
    n_inner = pl.num_programs(1)

    @pl.when(i == 0)
    def _():
        acc_ref[...] = jnp.zeros_like(acc_ref)

    x = x_ref[...].astype(jnp.float32)
    # Single-clamp penalty == (x - clip(x, max))^2 + (x - clip(x, min))^2
    # because at most one of the two violations is nonzero when min <= max.
    d = x - jnp.clip(x, jnp.float32(min_val), jnp.float32(max_val))
    sq = d * d

    row0 = (c * n_inner + i) * tile_rows    # unclamped row offset of this tile

    def fold(v):
        # (tile_rows, 128) -> (8, 128): pure VPU adds over whole vregs (the
        # reshape is a relabeling of the existing (8, 128) vreg tiling).
        return jnp.sum(v.reshape(-1, 8, v.shape[-1]), axis=0)

    # Fast path: the whole tile is valid data -> pure VPU accumulate.
    @pl.when(row0 + tile_rows <= valid_rows)
    def _():
        acc_ref[...] += fold(sq)

    # Slow path (at most one tile per core): mask rows beyond the real data.
    # jnp.where is a select, so garbage/NaN in the partial block cannot leak.
    @pl.when(row0 + tile_rows > valid_rows)
    def _():
        rows = jax.lax.broadcasted_iota(jnp.int32, sq.shape, 0) + row0
        acc_ref[...] += fold(jnp.where(rows < valid_rows, sq, jnp.float32(0.0)))

    @pl.when(i == n_inner - 1)
    def _():
        out_ref[0, 0] = jnp.sum(acc_ref[...]) * jnp.float32(scale)


def _tensorcores_per_device():
    try:
        kind = jax.devices()[0].device_kind.lower()
    except Exception:
        return 1, ""
    # v4 / v5p (megacore) and v7x expose two TensorCores per JAX device.
    if any(tag in kind for tag in ("v7", "v4", "v5p")):
        return 2, kind
    return 1, kind


@functools.partial(jax.jit, static_argnums=(1, 2, 3, 4))
def _tclip_loss_impl(x, min_val, max_val, weight, tile_rows):
    n_elems = x.size
    scale = float(weight) / float(n_elems)

    flat = x.reshape(-1)                  # keep original dtype; cast in-kernel
    rem = n_elems % _LANES
    n_main = n_elems - rem

    # <128 trailing elements: trivial jnp expression, no whole-tensor pad/copy.
    tail_loss = None
    if rem:
        t = flat[n_main:].astype(jnp.float32)
        dt = t - jnp.clip(t, jnp.float32(min_val), jnp.float32(max_val))
        tail_loss = jnp.sum(dt * dt) * jnp.float32(scale)
        if n_main == 0:                   # whole tensor fits in the tail path
            return tail_loss

    x2d = (flat[:n_main] if rem else flat).reshape(-1, _LANES)   # (R, 128)
    n_rows = x2d.shape[0]

    # Row-tile size: multiple of 8, capped so tiny inputs don't waste VMEM.
    tile_rows = max(8, (int(tile_rows) // 8) * 8)
    tile_rows = min(tile_rows, ((n_rows + 7) // 8) * 8)

    num_tiles = pl.cdiv(n_rows, tile_rows)

    n_cores, kind = _tensorcores_per_device()
    n_split = n_cores if num_tiles >= 2 else 1
    tiles_per_core = pl.cdiv(num_tiles, n_split)

    if n_split == 2 and "v7" in kind and hasattr(pltpu, "CORE_PARALLEL"):
        dim_sem = (pltpu.CORE_PARALLEL, pltpu.ARBITRARY)
    elif n_split == 2:
        dim_sem = ("parallel", "arbitrary")
    else:
        dim_sem = ("arbitrary", "arbitrary")

    def in_index_map(c, i):
        # Clamp so the DMA never goes out of bounds; clamped (duplicate)
        # tiles are fully masked in the kernel and contribute exactly zero.
        return (jnp.minimum(c * tiles_per_core + i, num_tiles - 1), 0)

    kernel = functools.partial(
        _tclip_kernel,
        tile_rows=tile_rows,
        valid_rows=n_rows,
        min_val=float(min_val),
        max_val=float(max_val),
        scale=scale,
    )

    partials = pl.pallas_call(
        kernel,
        out_shape=jax.ShapeDtypeStruct((n_split, 1), jnp.float32),
        grid_spec=pltpu.PrefetchScalarGridSpec(
            num_scalar_prefetch=0,
            grid=(n_split, tiles_per_core),
            in_specs=[pl.BlockSpec((tile_rows, _LANES), in_index_map)],
            out_specs=pl.BlockSpec((1, 1), lambda c, i: (c, 0),
                                   memory_space=pltpu.SMEM),
            scratch_shapes=[pltpu.VMEM((8, _LANES), jnp.float32)],
        ),
        compiler_params=pltpu.CompilerParams(
            dimension_semantics=dim_sem,
            vmem_limit_bytes=32 * 1024 * 1024),
    )(x2d)

    loss = jnp.sum(partials)
    if tail_loss is not None:
        loss = loss + tail_loss
    return loss


def tclip_loss(x, *, min_val=0.0, max_val=1.0, weight=1.0, tile_rows=4096):
    """Pallas implementation of TClipLoss.forward. Returns a float32 scalar."""
    assert min_val <= max_val, "TClipLoss kernel requires min_val <= max_val"
    assert x.size > 0, "TClipLoss kernel requires a non-empty tensor"
    return _tclip_loss_impl(x, float(min_val), float(max_val), float(weight),
                            int(tile_rows))


def tclip_loss_ref(x, *, min_val=0.0, max_val=1.0, weight=1.0):
    x = x.astype(jnp.float32)
    max_mask = jnp.minimum(x, jnp.float32(max_val))   # clip(x, max=max_val)
    min_mask = jnp.maximum(x, jnp.float32(min_val))   # clip(x, min=min_val)
    loss = jnp.mean((x - max_mask) ** 2) + jnp.mean((x - min_mask) ** 2)
    return loss * weight


if __name__ == "__main__":
    key = jax.random.PRNGKey(0)

    # (1) Aligned case (numel % 128 == 0); values outside [0, 1] so both clip
    #     terms are exercised.
    x = jax.random.normal(key, (2, 4, 16, 16), dtype=jnp.float32) * 2.0
    out = jax.block_until_ready(tclip_loss(x, min_val=0.0, max_val=1.0, weight=1.0))
    ref = jax.block_until_ready(tclip_loss_ref(x, min_val=0.0, max_val=1.0, weight=1.0))
    assert jnp.allclose(out, ref, rtol=1e-5, atol=1e-6), (out, ref)

    # (2) Ragged case: numel % 128 != 0 -> wrapper tail path + masked partial tile.
    y = jax.random.normal(jax.random.PRNGKey(0), (3, 5, 7, 11), jnp.float32) * 1.5
    out2 = jax.block_until_ready(tclip_loss(y, min_val=-0.25, max_val=0.75, weight=0.5))
    ref2 = jax.block_until_ready(tclip_loss_ref(y, min_val=-0.25, max_val=0.75, weight=0.5))
    assert jnp.allclose(out2, ref2, rtol=1e-5, atol=1e-6), (out2, ref2)

    # (3) Multi-tile accumulation (+ core split on 2-TC chips) via a small
    #     tile_rows override; also exercises the narrow-dtype (bf16) path.
    z = (jax.random.normal(jax.random.PRNGKey(0), (4, 8, 32, 32), jnp.float32) * 2.0
         ).astype(jnp.bfloat16)
    out3 = jax.block_until_ready(tclip_loss(z, min_val=0.0, max_val=1.0, weight=1.0,
                                            tile_rows=64))
    ref3 = jax.block_until_ready(tclip_loss_ref(z, min_val=0.0, max_val=1.0, weight=1.0))
    assert jnp.allclose(out3, ref3, rtol=1e-4, atol=1e-5), (out3, ref3)

    print("KERNEL_OK")
</pallas_src>

<mosaic_0001>
module attributes {stable_mosaic.version = 11 : i64} {
  func.func @_tclip_kernel(%arg0: i32, %arg1: i32, %arg2: memref<16x128xf32, #tpu.memory_space<vmem>>, %arg3: memref<1x1xf32, #tpu.memory_space<smem>>, %arg4: memref<8x128xf32, #tpu.memory_space<vmem>>) attributes {dimension_semantics = [#tpu.dimension_semantics<arbitrary>, #tpu.dimension_semantics<arbitrary>], iteration_bounds = array<i64: 1, 1>, scalar_prefetch = 0 : i64, scratch_operands = 1 : i64, tpu.core_type = #tpu.core_type<tc>, window_params = [{transform_indices = @transform_0, window_bounds = array<i64: 16, 128>}, {transform_indices = @transform_1, window_bounds = array<i64: 1, 1>}]} {
    %c0_i32 = arith.constant 0 : i32
    %0 = arith.cmpi eq, %arg1, %c0_i32 : i32
    %1 = arith.extui %0 : i1 to i32
    %c0_i32_0 = arith.constant 0 : i32
    %2 = arith.cmpi ne, %1, %c0_i32_0 : i32
    scf.if %2 {
      %cst_11 = arith.constant 0.000000e+00 : f32
      %24 = vector.broadcast %cst_11 : f32 to vector<8x128xf32>
      %c0_12 = arith.constant 0 : index
      %c0_13 = arith.constant 0 : index
      %25 = vector.load %arg4[%c0_12, %c0_13] : memref<8x128xf32, #tpu.memory_space<vmem>>, vector<8x128xf32>
      tpu.vector_store %arg4[%c0_12, %c0_13], %24 {strides = array<i32>} : memref<8x128xf32, #tpu.memory_space<vmem>>, vector<8x128xf32>,
    } else {
    }
    %c0 = arith.constant 0 : index
    %c0_1 = arith.constant 0 : index
    %3 = vector.load %arg2[%c0, %c0_1] : memref<16x128xf32, #tpu.memory_space<vmem>>, vector<16x128xf32>
    %cst = arith.constant 0.000000e+00 : f32
    %cst_2 = arith.constant 1.000000e+00 : f32
    %4 = vector.broadcast %cst : f32 to vector<16x128xf32>
    %5 = arith.maximumf %4, %3 : vector<16x128xf32>
    %6 = vector.broadcast %cst_2 : f32 to vector<16x128xf32>
    %7 = arith.minimumf %6, %5 : vector<16x128xf32>
    %8 = arith.subf %3, %7 : vector<16x128xf32>
    %9 = arith.mulf %8, %8 : vector<16x128xf32>
    %c1_i32 = arith.constant 1 : i32
    %10 = arith.muli %arg0, %c1_i32 : i32
    %11 = arith.addi %10, %arg1 : i32
    %c16_i32 = arith.constant 16 : i32
    %12 = arith.muli %11, %c16_i32 : i32
    %c16_i32_3 = arith.constant 16 : i32
    %13 = arith.addi %12, %c16_i32_3 : i32
    %c16_i32_4 = arith.constant 16 : i32
    %14 = arith.cmpi sle, %13, %c16_i32_4 : i32
    %15 = arith.extui %14 : i1 to i32
    %c0_i32_5 = arith.constant 0 : i32
    %16 = arith.cmpi ne, %15, %c0_i32_5 : i32
    scf.if %16 {
      %c0_11 = arith.constant 0 : index
      %c0_12 = arith.constant 0 : index
      %24 = vector.load %arg4[%c0_11, %c0_12] : memref<8x128xf32, #tpu.memory_space<vmem>>, vector<8x128xf32>
      %25 = vector.shape_cast %9 : vector<16x128xf32> to vector<2x8x128xf32>
      %cst_13 = arith.constant dense<0.000000e+00> : vector<8x128xf32>
      %26 = vector.multi_reduction <add>, %25, %cst_13 [0] : vector<2x8x128xf32> to vector<8x128xf32>
      %27 = arith.addf %24, %26 : vector<8x128xf32>
      %c0_14 = arith.constant 0 : index
      %c0_15 = arith.constant 0 : index
      %28 = vector.load %arg4[%c0_14, %c0_15] : memref<8x128xf32, #tpu.memory_space<vmem>>, vector<8x128xf32>
      tpu.vector_store %arg4[%c0_14, %c0_15], %27 {strides = array<i32>} : memref<8x128xf32, #tpu.memory_space<vmem>>, vector<8x128xf32>,
    } else {
    }
    %c16_i32_6 = arith.constant 16 : i32
    %17 = arith.addi %12, %c16_i32_6 : i32
    %c16_i32_7 = arith.constant 16 : i32
    %18 = arith.cmpi sgt, %17, %c16_i32_7 : i32
    %19 = arith.extui %18 : i1 to i32
    %c0_i32_8 = arith.constant 0 : i32
    %20 = arith.cmpi ne, %19, %c0_i32_8 : i32
    scf.if %20 {
      %24 = tpu.iota {dimensions = array<i32: 0>} : vector<16x128xi32>
      %25 = vector.broadcast %12 : i32 to vector<16x128xi32>
      %26 = arith.addi %24, %25 : vector<16x128xi32>
      %c0_11 = arith.constant 0 : index
      %c0_12 = arith.constant 0 : index
      %27 = vector.load %arg4[%c0_11, %c0_12] : memref<8x128xf32, #tpu.memory_space<vmem>>, vector<8x128xf32>
      %c16_i32_13 = arith.constant 16 : i32
      %28 = vector.broadcast %c16_i32_13 : i32 to vector<16x128xi32>
      %29 = arith.cmpi slt, %26, %28 : vector<16x128xi32>
      %cst_14 = arith.constant 0.000000e+00 : f32
      %30 = vector.broadcast %cst_14 : f32 to vector<16x128xf32>
      %31 = arith.select %29, %9, %30 : vector<16x128xi1>, vector<16x128xf32>
      %32 = vector.shape_cast %31 : vector<16x128xf32> to vector<2x8x128xf32>
      %cst_15 = arith.constant dense<0.000000e+00> : vector<8x128xf32>
      %33 = vector.multi_reduction <add>, %32, %cst_15 [0] : vector<2x8x128xf32> to vector<8x128xf32>
      %34 = arith.addf %27, %33 : vector<8x128xf32>
      %c0_16 = arith.constant 0 : index
      %c0_17 = arith.constant 0 : index
      %35 = vector.load %arg4[%c0_16, %c0_17] : memref<8x128xf32, #tpu.memory_space<vmem>>, vector<8x128xf32>
      tpu.vector_store %arg4[%c0_16, %c0_17], %34 {strides = array<i32>} : memref<8x128xf32, #tpu.memory_space<vmem>>, vector<8x128xf32>,
    } else {
    }
    %c0_i32_9 = arith.constant 0 : i32
    %21 = arith.cmpi eq, %arg1, %c0_i32_9 : i32
    %22 = arith.extui %21 : i1 to i32
    %c0_i32_10 = arith.constant 0 : i32
    %23 = arith.cmpi ne, %22, %c0_i32_10 : i32
    scf.if %23 {
      %c0_11 = arith.constant 0 : index
      %c0_12 = arith.constant 0 : index
      %24 = vector.load %arg4[%c0_11, %c0_12] : memref<8x128xf32, #tpu.memory_space<vmem>>, vector<8x128xf32>
      %25 = vector.shape_cast %24 : vector<8x128xf32> to vector<1x8x128xf32>
      %cst_13 = arith.constant dense<0.000000e+00> : vector<1xf32>
      %26 = vector.multi_reduction <add>, %25, %cst_13 [1, 2] : vector<1x8x128xf32> to vector<1xf32>
      %27 = vector.shape_cast %26 : vector<1xf32> to vector<1x1x1xf32>
      %28 = vector.extract %27[0, 0, 0] : f32 from vector<1x1x1xf32>
      %cst_14 = arith.constant 4.8828125E-4 : f32
      %29 = arith.mulf %28, %cst_14 : f32
      %c0_15 = arith.constant 0 : index
      %c0_16 = arith.constant 0 : index
      %30 = memref.load %arg3[%c0_15, %c0_16] : memref<1x1xf32, #tpu.memory_space<smem>>
      memref.store %29, %arg3[%c0_15, %c0_16] : memref<1x1xf32, #tpu.memory_space<smem>>
    } else {
    }
    return
  }
  func.func @transform_0(%arg0: i32, %arg1: i32) -> (i32, i32) {
    %c1_i32 = arith.constant 1 : i32
    %0 = arith.muli %arg0, %c1_i32 : i32
    %1 = arith.addi %0, %arg1 : i32
    %c0_i32 = arith.constant 0 : i32
    %2 = arith.minsi %1, %c0_i32 : i32
    %c0_i32_0 = arith.constant 0 : i32
    %c0_i32_1 = arith.constant 0 : i32
    return %2, %c0_i32_0 : i32, i32
  }
  func.func @transform_1(%arg0: i32, %arg1: i32) -> (i32, i32) {
    %c0_i32 = arith.constant 0 : i32
    %c0_i32_0 = arith.constant 0 : i32
    return %arg0, %c0_i32 : i32, i32
  }
}

</mosaic_0001>

<bundles_post_ra>
// kernel: _tclip_loss_impl.1
= control target key start
LH: loop header
LB: loop body
LE: loop exit
PB: predicated region body
PF: predicated region fallthrough
CT: control target
= control target key end

     0   :  { %s159_s0 = inlined_call_operand.vmem [shape: f32[16,128], index: 0, kind: input, shape index: {}]   ;;  %s160_s1 = inlined_call_operand.hbm [shape: f32[1,1], index: 1, kind: output, shape index: {}]  }
   0x1   :  { %v46_v0 = vld [vmem:[%s159_s0] sm:$0xff]  ;;  %v47_v1 = vld [vmem:[%s159_s0 + $0x8] sm:$0xff] }
   0x2   :  { %6 = vsyncpa [#allocation4], 0  ;;  %v48_v2 = vmax.f32 %v46_v0, 0.0  ;;  %v49_v3 = vmax.f32 %v47_v1, 0.0  ;;  %s106_s11 = sshll.u32 %s160_s1, 4  ;;  %s139_s14 = smov [#allocation3]   ;;  %s107_s11 = int_to_ptr.hbm [resolvable:$true] %s106_s11 }
   0x4   :  { %v50_v4 = vmin.f32 %v48_v2, 1.0  ;;  %v51_v5 = vmin.f32 %v49_v3, 1.0 }
   0x6   :  { %v52_v6 = vsub.f32 %v46_v0, %v50_v4  ;;  %v53_v7 = vsub.f32 %v47_v1, %v51_v5 }
   0x8   :  { %v54_v8 = vmul.f32 %v52_v6, %v52_v6  ;;  %v55_v9 = vmul.f32 %v53_v7, %v53_v7 }
   0xa   :  { %v64_v10 = vadd.f32 %v55_v9, %v54_v8 }
   0xc   :  { %89 = vadd.xlane.f32.xlu0 %v64_v10 }
  0x7f   :  { %v90_v11 = vpop.xlane.xlu0 %89 }
  0x80   :  { %v91_v12 = vrot.slane %v90_v11, 4 }
  0x82   :  { %v92_v13 = vadd.f32 %v91_v12, %v90_v11 }
  0x84   :  { %v93_v14 = vrot.slane %v92_v13, 2 }
  0x86   :  { %v94_v15 = vadd.f32 %v93_v14, %v92_v13 }
  0x88   :  { %v95_v16 = vrot.slane %v94_v15, 1 }
  0x8a   :  { %v96_v17 = vadd.f32 %v95_v16, %v94_v15 }
  0x8c   :  { %122 = vpush %v96_v17 }
  0xbd   :  { %s123_s12 = spop %122 }
  0xbe   :  { %s98_s13 = smul.f32 0.00048828125, %s123_s12 }
  0xc0   :  { %100 = sst [smem:[#allocation3]] %s98_s13 }
  0xc1   :  { %109 = dma.smem_to_hbm %s139_s14, 16, %s107_s11, [#allocation4]  }
  0xc2   :  { %137 = dma.done.wait [#allocation4], 16  }
  0xc3   :  { %138 = vsyncadd [#allocation4], 4294967280 }
  0xc4   :  { %114 = sfence }
  0xc5   :  { %115 = vsyncpa [#allocation4], 1 }

</bundles_post_ra>
